<compile_context>
chip_gen: v7x
topology: tpu7x:2x2x1
jax: 0.10.0
libtpu: 0.0.40
codegen_flags: <defaults>
</compile_context>

<pallas_src>
import functools

import jax
import jax.numpy as jnp
from jax.experimental import pallas as pl
from jax.experimental.pallas import tpu as pltpu


_GRP = 8                      # rows per group == sublane count of the out tile
_GBUF = 2                     # groups of row-DMAs kept in flight (2 * 8 = 16)
_LANE = 128                   # lane width; feature dim padded to a multiple
_MAX_TOKENS_PER_CALL = 16384  # caps the SMEM-resident id vector (~64 KiB)


def _round_up(x, m):
    return ((x + m - 1) // m) * m


def prepare_embedding_table(table):
    """One-time (init-time) padding of the feature dim to a multiple of 128.

    Done outside the forward so the hot path never copies/pads the full table.
    """
    _, d_model = table.shape
    d_pad = _round_up(d_model, _LANE)
    if d_pad != d_model:
        table = jnp.pad(table, ((0, 0), (0, d_pad - d_model)))
    return table


def _embed_gather_kernel(ids_ref, table_ref, out_ref, sems, *, num_groups):
    """Gather num_groups * 8 embedding rows into this grid step's output tile.

    ids_ref  : SMEM (n_slab,) int32   -- token ids for the whole call
    table_ref: (vocab, 1, d_pad)      -- resident VMEM block (fast path) or a
                                         raw HBM ref (memory_space=pl.ANY)
    out_ref  : VMEM (num_groups, 8, d_pad) output tile
    sems     : DMA semaphores, shape (8, _GBUF)
    """
    base = pl.program_id(0) * (num_groups * _GRP)

    def row_copy(g, j):
        tok = ids_ref[base + g * _GRP + j]
        return pltpu.make_async_copy(
            table_ref.at[tok],                  # (1, d_pad) source row
            out_ref.at[g, pl.ds(j, 1), :],      # (1, d_pad) destination row
            sems.at[j, g % _GBUF],
        )

    def start_group(g):
        for j in range(_GRP):                   # static 8-way unroll
            row_copy(g, j).start()

    def wait_group(g):
        for j in range(_GRP):
            row_copy(g, j).wait()               # identical descriptor -> exact wait

    n_prime = min(_GBUF, num_groups)

    # Fill the in-flight window (up to _GBUF groups = _GBUF * 8 row DMAs).
    @pl.loop(0, n_prime)
    def _(g):
        start_group(g)

    # Steady state: retire group g, then reuse its semaphore slot for g+_GBUF.
    if num_groups > n_prime:
        @pl.loop(0, num_groups - n_prime)
        def _(g):
            wait_group(g)
            start_group(g + n_prime)

    # Drain the tail of the window.
    @pl.loop(num_groups - n_prime, num_groups)
    def _(g):
        wait_group(g)


@functools.partial(jax.jit, static_argnums=(2,))
def embedder_forward(x_ids, table_padded, d_model):
    """nn.Embedding forward: out[b, s, :] = table[x_ids[b, s], :]."""
    B, S = x_ids.shape
    vocab, d_pad = table_padded.shape
    assert d_pad % _LANE == 0, "pad the table once with prepare_embedding_table()"
    assert 0 < d_model <= d_pad
    n_tok = B * S
    itemsize = jnp.dtype(table_padded.dtype).itemsize
    row_bytes = d_pad * itemsize

    # ---- Tile sizing: ~1 MiB of output per grid step (64..512 rows), but keep
    # at least two grid steps when the input allows it (both TensorCores work).
    tt = max(64, min(512, (1 << 20) // row_bytes))
    n_r8 = _round_up(n_tok, _GRP)
    if n_r8 >= 2 * _GRP:
        tt = min(tt, max(n_r8 // 2, _GRP))
    else:
        tt = min(tt, n_r8)
    tt = _round_up(max(tt, _GRP), _GRP)
    n_pad = _round_up(n_tok, tt)

    # ---- VMEM budget (leave headroom; v7x has only 64 MiB per TensorCore).
    try:
        vmem_cap = int(getattr(pltpu.get_tpu_info(), "vmem_capacity_bytes", 64 << 20))
    except Exception:
        vmem_cap = 64 << 20
    vmem_budget = (3 * vmem_cap) // 4

    out_tile_bytes = tt * row_bytes
    # Fast-path table is stored (vocab, 1, d_pad) so rows sit on an untiled
    # leading dim; the size-1 sublane dim costs 8x VMEM (accounted for here).
    table_vmem_bytes = vocab * _GRP * row_bytes
    use_vmem_table = (2 * table_vmem_bytes + 2 * out_tile_bytes + (4 << 20)
                      <= vmem_budget)
    need = 2 * out_tile_bytes + (2 * table_vmem_bytes if use_vmem_table else 0) \
        + (4 << 20)
    vmem_limit = int(min(max(need, 8 << 20), vmem_budget))

    table3 = table_padded.reshape(vocab, 1, d_pad)      # free reshape
    if use_vmem_table:
        # Constant index_map -> fetched from HBM once, resident across the
        # grid; rows are then gathered with cheap local VMEM->VMEM DMAs.
        table_spec = pl.BlockSpec((vocab, 1, d_pad), lambda i: (0, 0, 0))
    else:
        # Large vocab: table stays in HBM, rows are gathered HBM->VMEM.
        table_spec = pl.BlockSpec(memory_space=pl.ANY)

    # ---- ids: clip (cheap insurance against an OOB row DMA), pad with id 0.
    ids_flat = jnp.clip(x_ids.reshape(-1).astype(jnp.int32), 0, vocab - 1)
    if n_pad != n_tok:
        ids_flat = jnp.pad(ids_flat, (0, n_pad - n_tok))

    kernel = functools.partial(_embed_gather_kernel, num_groups=tt // _GRP)

    def run_slab(ids_slab):
        n_slab = ids_slab.shape[0]               # static multiple of tt
        return pl.pallas_call(
            kernel,
            out_shape=jax.ShapeDtypeStruct((n_slab // _GRP, _GRP, d_pad),
                                           table_padded.dtype),
            grid=(n_slab // tt,),
            in_specs=[
                # Slab ids live in SMEM for the whole call (slab size is capped
                # so this stays small regardless of batch*seq).
                pl.BlockSpec(memory_space=pltpu.MemorySpace.SMEM),
                table_spec,
            ],
            out_specs=pl.BlockSpec((tt // _GRP, _GRP, d_pad),
                                   lambda i: (i, 0, 0)),
            scratch_shapes=[pltpu.SemaphoreType.DMA((_GRP, _GBUF))],
            compiler_params=pltpu.CompilerParams(
                dimension_semantics=("parallel",),
                vmem_limit_bytes=vmem_limit,
            ),
        )(ids_slab, table3)

    # Cap tokens per pallas_call so the SMEM id vector stays ~64 KiB even for
    # huge B*S; each slab still moves many MiB of embedding rows.
    slab = max(tt, (_MAX_TOKENS_PER_CALL // tt) * tt)
    outs = []
    for s0 in range(0, n_pad, slab):
        n_slab = min(slab, n_pad - s0)
        outs.append(run_slab(ids_flat[s0:s0 + n_slab]))
    if len(outs) == 1:
        out_flat = outs[0].reshape(-1, d_pad)
    else:
        out_flat = jnp.concatenate([o.reshape(-1, d_pad) for o in outs], axis=0)

    return out_flat[:n_tok, :d_model].reshape(B, S, d_model)


if __name__ == "__main__":
    # Small, deterministic setup consistent with Embedder(vocab_size, d_model).
    vocab_size = 64
    d_model = 128
    B, S = 2, 8

    key = jax.random.PRNGKey(0)
    k_tab, k_ids = jax.random.split(key)

    # nn.Embedding default init: N(0, 1) weights.
    table = jax.random.normal(k_tab, (vocab_size, d_model), dtype=jnp.float32)
    x = jax.random.randint(k_ids, (B, S), 0, vocab_size, dtype=jnp.int32)

    table_padded = prepare_embedding_table(table)   # init-time, not per-forward
    out = embedder_forward(x, table_padded, d_model)
    out = jax.block_until_ready(out)

    # Reference check against plain JAX gather.
    ref = jnp.take(table, x, axis=0)
    assert out.shape == (B, S, d_model)
    assert jnp.array_equal(out, ref), "mismatch vs jnp.take reference"

    print("KERNEL_OK")
</pallas_src>

<mosaic_0001>
module attributes {stable_mosaic.version = 11 : i64} {
  func.func @_embed_gather_kernel(%arg0: i32, %arg1: memref<16xi32, #tpu.memory_space<smem>>, %arg2: memref<64x1x128xf32, #tpu.memory_space<vmem>>, %arg3: memref<1x8x128xf32, #tpu.memory_space<vmem>>, %arg4: memref<8x2x!tpu.dma_semaphore, #tpu.memory_space<semaphore_mem>>) attributes {dimension_semantics = [#tpu.dimension_semantics<parallel>], iteration_bounds = array<i64: 2>, scalar_prefetch = 0 : i64, scratch_operands = 1 : i64, tpu.core_type = #tpu.core_type<tc>, window_params = [{transform_indices = @transform_0, window_bounds = array<i64: 16>}, {pipeline_mode = #tpu.pipeline_mode<synchronous>, transform_indices = @transform_1, window_bounds = array<i64: 64, 1, 128>}, {transform_indices = @transform_2, window_bounds = array<i64: 1, 8, 128>}]} {
    %c8_i32 = arith.constant 8 : i32
    %0 = arith.muli %arg0, %c8_i32 : i32
    %c0_i32 = arith.constant 0 : i32
    %c1_i32 = arith.constant 1 : i32
    %1 = arith.muli %c0_i32, %c1_i32 : i32
    %c0_i32_0 = arith.constant 0 : i32
    %2 = arith.addi %c0_i32_0, %1 : i32
    %c8_i32_1 = arith.constant 8 : i32
    %3 = arith.muli %2, %c8_i32_1 : i32
    %4 = arith.addi %0, %3 : i32
    %c0_i32_2 = arith.constant 0 : i32
    %5 = arith.addi %4, %c0_i32_2 : i32
    %6 = arith.index_cast %5 : i32 to index
    %7 = memref.load %arg1[%6] : memref<16xi32, #tpu.memory_space<smem>>
    %c2_i32 = arith.constant 2 : i32
    %c0_i32_3 = arith.constant 0 : i32
    %8 = arith.cmpi eq, %c2_i32, %c0_i32_3 : i32
    %c1_i32_4 = arith.constant 1 : i32
    %9 = arith.select %8, %c1_i32_4, %c2_i32 : i32
    %10 = arith.remsi %2, %9 : i32
    %c0_i32_5 = arith.constant 0 : i32
    %11 = arith.cmpi ne, %10, %c0_i32_5 : i32
    %c0_i32_6 = arith.constant 0 : i32
    %12 = arith.cmpi slt, %10, %c0_i32_6 : i32
    %c0_i32_7 = arith.constant 0 : i32
    %13 = arith.cmpi slt, %9, %c0_i32_7 : i32
    %14 = arith.xori %12, %13 : i1
    %15 = arith.andi %14, %11 : i1
    %16 = arith.addi %10, %9 : i32
    %17 = arith.select %15, %16, %10 : i32
    %c0_i32_8 = arith.constant 0 : i32
    %c0_i32_9 = arith.constant 0 : i32
    %c0_i32_10 = arith.constant 0 : i32
    %18 = tpu.memref_slice %arg2[%7, %c0_i32_9, %c0_i32_10] : memref<64x1x128xf32, #tpu.memory_space<vmem>> -> memref<1x1x128xf32, #tpu.memory_space<vmem>>
    %19 = tpu.memref_squeeze %18 : memref<1x1x128xf32, #tpu.memory_space<vmem>> -> memref<1x128xf32, #tpu.memory_space<vmem>>
    %c0_i32_11 = arith.constant 0 : i32
    %c0_i32_12 = arith.constant 0 : i32
    %20 = tpu.memref_slice %arg3[%2, %c0_i32_11, %c0_i32_12] : memref<1x8x128xf32, #tpu.memory_space<vmem>> -> memref<1x1x128xf32, #tpu.memory_space<vmem>>
    %21 = tpu.memref_squeeze %20 : memref<1x1x128xf32, #tpu.memory_space<vmem>> -> memref<1x128xf32, #tpu.memory_space<vmem>>
    %22 = tpu.memref_slice %arg4[%c0_i32_8, %17] : memref<8x2x!tpu.dma_semaphore, #tpu.memory_space<semaphore_mem>> -> memref<1x1x!tpu.dma_semaphore, #tpu.memory_space<semaphore_mem>>
    %23 = tpu.memref_squeeze %22 : memref<1x1x!tpu.dma_semaphore, #tpu.memory_space<semaphore_mem>> -> memref<!tpu.dma_semaphore, #tpu.memory_space<semaphore_mem>>
    tpu.enqueue_dma source(%19 : memref<1x128xf32, #tpu.memory_space<vmem>>) target(%21 : memref<1x128xf32, #tpu.memory_space<vmem>>) target_semaphore(%23 : memref<!tpu.dma_semaphore, #tpu.memory_space<semaphore_mem>>)
    %c8_i32_13 = arith.constant 8 : i32
    %24 = arith.muli %2, %c8_i32_13 : i32
    %25 = arith.addi %0, %24 : i32
    %c1_i32_14 = arith.constant 1 : i32
    %26 = arith.addi %25, %c1_i32_14 : i32
    %27 = arith.index_cast %26 : i32 to index
    %28 = memref.load %arg1[%27] : memref<16xi32, #tpu.memory_space<smem>>
    %c2_i32_15 = arith.constant 2 : i32
    %c0_i32_16 = arith.constant 0 : i32
    %29 = arith.cmpi eq, %c2_i32_15, %c0_i32_16 : i32
    %c1_i32_17 = arith.constant 1 : i32
    %30 = arith.select %29, %c1_i32_17, %c2_i32_15 : i32
    %31 = arith.remsi %2, %30 : i32
    %c0_i32_18 = arith.constant 0 : i32
    %32 = arith.cmpi ne, %31, %c0_i32_18 : i32
    %c0_i32_19 = arith.constant 0 : i32
    %33 = arith.cmpi slt, %31, %c0_i32_19 : i32
    %c0_i32_20 = arith.constant 0 : i32
    %34 = arith.cmpi slt, %30, %c0_i32_20 : i32
    %35 = arith.xori %33, %34 : i1
    %36 = arith.andi %35, %32 : i1
    %37 = arith.addi %31, %30 : i32
    %38 = arith.select %36, %37, %31 : i32
    %c1_i32_21 = arith.constant 1 : i32
    %c0_i32_22 = arith.constant 0 : i32
    %c0_i32_23 = arith.constant 0 : i32
    %39 = tpu.memref_slice %arg2[%28, %c0_i32_22, %c0_i32_23] : memref<64x1x128xf32, #tpu.memory_space<vmem>> -> memref<1x1x128xf32, #tpu.memory_space<vmem>>
    %40 = tpu.memref_squeeze %39 : memref<1x1x128xf32, #tpu.memory_space<vmem>> -> memref<1x128xf32, #tpu.memory_space<vmem>>
    %c1_i32_24 = arith.constant 1 : i32
    %c0_i32_25 = arith.constant 0 : i32
    %41 = tpu.memref_slice %arg3[%2, %c1_i32_24, %c0_i32_25] : memref<1x8x128xf32, #tpu.memory_space<vmem>> -> memref<1x1x128xf32, #tpu.memory_space<vmem>>
    %42 = tpu.memref_squeeze %41 : memref<1x1x128xf32, #tpu.memory_space<vmem>> -> memref<1x128xf32, #tpu.memory_space<vmem>>
    %43 = tpu.memref_slice %arg4[%c1_i32_21, %38] : memref<8x2x!tpu.dma_semaphore, #tpu.memory_space<semaphore_mem>> -> memref<1x1x!tpu.dma_semaphore, #tpu.memory_space<semaphore_mem>>
    %44 = tpu.memref_squeeze %43 : memref<1x1x!tpu.dma_semaphore, #tpu.memory_space<semaphore_mem>> -> memref<!tpu.dma_semaphore, #tpu.memory_space<semaphore_mem>>
    tpu.enqueue_dma source(%40 : memref<1x128xf32, #tpu.memory_space<vmem>>) target(%42 : memref<1x128xf32, #tpu.memory_space<vmem>>) target_semaphore(%44 : memref<!tpu.dma_semaphore, #tpu.memory_space<semaphore_mem>>)
    %c8_i32_26 = arith.constant 8 : i32
    %45 = arith.muli %2, %c8_i32_26 : i32
    %46 = arith.addi %0, %45 : i32
    %c2_i32_27 = arith.constant 2 : i32
    %47 = arith.addi %46, %c2_i32_27 : i32
    %48 = arith.index_cast %47 : i32 to index
    %49 = memref.load %arg1[%48] : memref<16xi32, #tpu.memory_space<smem>>
    %c2_i32_28 = arith.constant 2 : i32
    %c0_i32_29 = arith.constant 0 : i32
    %50 = arith.cmpi eq, %c2_i32_28, %c0_i32_29 : i32
    %c1_i32_30 = arith.constant 1 : i32
    %51 = arith.select %50, %c1_i32_30, %c2_i32_28 : i32
    %52 = arith.remsi %2, %51 : i32
    %c0_i32_31 = arith.constant 0 : i32
    %53 = arith.cmpi ne, %52, %c0_i32_31 : i32
    %c0_i32_32 = arith.constant 0 : i32
    %54 = arith.cmpi slt, %52, %c0_i32_32 : i32
    %c0_i32_33 = arith.constant 0 : i32
    %55 = arith.cmpi slt, %51, %c0_i32_33 : i32
    %56 = arith.xori %54, %55 : i1
    %57 = arith.andi %56, %53 : i1
    %58 = arith.addi %52, %51 : i32
    %59 = arith.select %57, %58, %52 : i32
    %c2_i32_34 = arith.constant 2 : i32
    %c0_i32_35 = arith.constant 0 : i32
    %c0_i32_36 = arith.constant 0 : i32
    %60 = tpu.memref_slice %arg2[%49, %c0_i32_35, %c0_i32_36] : memref<64x1x128xf32, #tpu.memory_space<vmem>> -> memref<1x1x128xf32, #tpu.memory_space<vmem>>
    %61 = tpu.memref_squeeze %60 : memref<1x1x128xf32, #tpu.memory_space<vmem>> -> memref<1x128xf32, #tpu.memory_space<vmem>>
    %c2_i32_37 = arith.constant 2 : i32
    %c0_i32_38 = arith.constant 0 : i32
    %62 = tpu.memref_slice %arg3[%2, %c2_i32_37, %c0_i32_38] : memref<1x8x128xf32, #tpu.memory_space<vmem>> -> memref<1x1x128xf32, #tpu.memory_space<vmem>>
    %63 = tpu.memref_squeeze %62 : memref<1x1x128xf32, #tpu.memory_space<vmem>> -> memref<1x128xf32, #tpu.memory_space<vmem>>
    %64 = tpu.memref_slice %arg4[%c2_i32_34, %59] : memref<8x2x!tpu.dma_semaphore, #tpu.memory_space<semaphore_mem>> -> memref<1x1x!tpu.dma_semaphore, #tpu.memory_space<semaphore_mem>>
    %65 = tpu.memref_squeeze %64 : memref<1x1x!tpu.dma_semaphore, #tpu.memory_space<semaphore_mem>> -> memref<!tpu.dma_semaphore, #tpu.memory_space<semaphore_mem>>
    tpu.enqueue_dma source(%61 : memref<1x128xf32, #tpu.memory_space<vmem>>) target(%63 : memref<1x128xf32, #tpu.memory_space<vmem>>) target_semaphore(%65 : memref<!tpu.dma_semaphore, #tpu.memory_space<semaphore_mem>>)
    %c8_i32_39 = arith.constant 8 : i32
    %66 = arith.muli %2, %c8_i32_39 : i32
    %67 = arith.addi %0, %66 : i32
    %c3_i32 = arith.constant 3 : i32
    %68 = arith.addi %67, %c3_i32 : i32
    %69 = arith.index_cast %68 : i32 to index
    %70 = memref.load %arg1[%69] : memref<16xi32, #tpu.memory_space<smem>>
    %c2_i32_40 = arith.constant 2 : i32
    %c0_i32_41 = arith.constant 0 : i32
    %71 = arith.cmpi eq, %c2_i32_40, %c0_i32_41 : i32
    %c1_i32_42 = arith.constant 1 : i32
    %72 = arith.select %71, %c1_i32_42, %c2_i32_40 : i32
    %73 = arith.remsi %2, %72 : i32
    %c0_i32_43 = arith.constant 0 : i32
    %74 = arith.cmpi ne, %73, %c0_i32_43 : i32
    %c0_i32_44 = arith.constant 0 : i32
    %75 = arith.cmpi slt, %73, %c0_i32_44 : i32
    %c0_i32_45 = arith.constant 0 : i32
    %76 = arith.cmpi slt, %72, %c0_i32_45 : i32
    %77 = arith.xori %75, %76 : i1
    %78 = arith.andi %77, %74 : i1
    %79 = arith.addi %73, %72 : i32
    %80 = arith.select %78, %79, %73 : i32
    %c3_i32_46 = arith.constant 3 : i32
    %c0_i32_47 = arith.constant 0 : i32
    %c0_i32_48 = arith.constant 0 : i32
    %81 = tpu.memref_slice %arg2[%70, %c0_i32_47, %c0_i32_48] : memref<64x1x128xf32, #tpu.memory_space<vmem>> -> memref<1x1x128xf32, #tpu.memory_space<vmem>>
    %82 = tpu.memref_squeeze %81 : memref<1x1x128xf32, #tpu.memory_space<vmem>> -> memref<1x128xf32, #tpu.memory_space<vmem>>
    %c3_i32_49 = arith.constant 3 : i32
    %c0_i32_50 = arith.constant 0 : i32
    %83 = tpu.memref_slice %arg3[%2, %c3_i32_49, %c0_i32_50] : memref<1x8x128xf32, #tpu.memory_space<vmem>> -> memref<1x1x128xf32, #tpu.memory_space<vmem>>
    %84 = tpu.memref_squeeze %83 : memref<1x1x128xf32, #tpu.memory_space<vmem>> -> memref<1x128xf32, #tpu.memory_space<vmem>>
    %85 = tpu.memref_slice %arg4[%c3_i32_46, %80] : memref<8x2x!tpu.dma_semaphore, #tpu.memory_space<semaphore_mem>> -> memref<1x1x!tpu.dma_semaphore, #tpu.memory_space<semaphore_mem>>
    %86 = tpu.memref_squeeze %85 : memref<1x1x!tpu.dma_semaphore, #tpu.memory_space<semaphore_mem>> -> memref<!tpu.dma_semaphore, #tpu.memory_space<semaphore_mem>>
    tpu.enqueue_dma source(%82 : memref<1x128xf32, #tpu.memory_space<vmem>>) target(%84 : memref<1x128xf32, #tpu.memory_space<vmem>>) target_semaphore(%86 : memref<!tpu.dma_semaphore, #tpu.memory_space<semaphore_mem>>)
    %c8_i32_51 = arith.constant 8 : i32
    %87 = arith.muli %2, %c8_i32_51 : i32
    %88 = arith.addi %0, %87 : i32
    %c4_i32 = arith.constant 4 : i32
    %89 = arith.addi %88, %c4_i32 : i32
    %90 = arith.index_cast %89 : i32 to index
    %91 = memref.load %arg1[%90] : memref<16xi32, #tpu.memory_space<smem>>
    %c2_i32_52 = arith.constant 2 : i32
    %c0_i32_53 = arith.constant 0 : i32
    %92 = arith.cmpi eq, %c2_i32_52, %c0_i32_53 : i32
    %c1_i32_54 = arith.constant 1 : i32
    %93 = arith.select %92, %c1_i32_54, %c2_i32_52 : i32
    %94 = arith.remsi %2, %93 : i32
    %c0_i32_55 = arith.constant 0 : i32
    %95 = arith.cmpi ne, %94, %c0_i32_55 : i32
    %c0_i32_56 = arith.constant 0 : i32
    %96 = arith.cmpi slt, %94, %c0_i32_56 : i32
    %c0_i32_57 = arith.constant 0 : i32
    %97 = arith.cmpi slt, %93, %c0_i32_57 : i32
    %98 = arith.xori %96, %97 : i1
    %99 = arith.andi %98, %95 : i1
    %100 = arith.addi %94, %93 : i32
    %101 = arith.select %99, %100, %94 : i32
    %c4_i32_58 = arith.constant 4 : i32
    %c0_i32_59 = arith.constant 0 : i32
    %c0_i32_60 = arith.constant 0 : i32
    %102 = tpu.memref_slice %arg2[%91, %c0_i32_59, %c0_i32_60] : memref<64x1x128xf32, #tpu.memory_space<vmem>> -> memref<1x1x128xf32, #tpu.memory_space<vmem>>
    %103 = tpu.memref_squeeze %102 : memref<1x1x128xf32, #tpu.memory_space<vmem>> -> memref<1x128xf32, #tpu.memory_space<vmem>>
    %c4_i32_61 = arith.constant 4 : i32
    %c0_i32_62 = arith.constant 0 : i32
    %104 = tpu.memref_slice %arg3[%2, %c4_i32_61, %c0_i32_62] : memref<1x8x128xf32, #tpu.memory_space<vmem>> -> memref<1x1x128xf32, #tpu.memory_space<vmem>>
    %105 = tpu.memref_squeeze %104 : memref<1x1x128xf32, #tpu.memory_space<vmem>> -> memref<1x128xf32, #tpu.memory_space<vmem>>
    %106 = tpu.memref_slice %arg4[%c4_i32_58, %101] : memref<8x2x!tpu.dma_semaphore, #tpu.memory_space<semaphore_mem>> -> memref<1x1x!tpu.dma_semaphore, #tpu.memory_space<semaphore_mem>>
    %107 = tpu.memref_squeeze %106 : memref<1x1x!tpu.dma_semaphore, #tpu.memory_space<semaphore_mem>> -> memref<!tpu.dma_semaphore, #tpu.memory_space<semaphore_mem>>
    tpu.enqueue_dma source(%103 : memref<1x128xf32, #tpu.memory_space<vmem>>) target(%105 : memref<1x128xf32, #tpu.memory_space<vmem>>) target_semaphore(%107 : memref<!tpu.dma_semaphore, #tpu.memory_space<semaphore_mem>>)
    %c8_i32_63 = arith.constant 8 : i32
    %108 = arith.muli %2, %c8_i32_63 : i32
    %109 = arith.addi %0, %108 : i32
    %c5_i32 = arith.constant 5 : i32
    %110 = arith.addi %109, %c5_i32 : i32
    %111 = arith.index_cast %110 : i32 to index
    %112 = memref.load %arg1[%111] : memref<16xi32, #tpu.memory_space<smem>>
    %c2_i32_64 = arith.constant 2 : i32
    %c0_i32_65 = arith.constant 0 : i32
    %113 = arith.cmpi eq, %c2_i32_64, %c0_i32_65 : i32
    %c1_i32_66 = arith.constant 1 : i32
    %114 = arith.select %113, %c1_i32_66, %c2_i32_64 : i32
    %115 = arith.remsi %2, %114 : i32
    %c0_i32_67 = arith.constant 0 : i32
    %116 = arith.cmpi ne, %115, %c0_i32_67 : i32
    %c0_i32_68 = arith.constant 0 : i32
    %117 = arith.cmpi slt, %115, %c0_i32_68 : i32
    %c0_i32_69 = arith.constant 0 : i32
    %118 = arith.cmpi slt, %114, %c0_i32_69 : i32
    %119 = arith.xori %117, %118 : i1
    %120 = arith.andi %119, %116 : i1
    %121 = arith.addi %115, %114 : i32
    %122 = arith.select %120, %121, %115 : i32
    %c5_i32_70 = arith.constant 5 : i32
    %c0_i32_71 = arith.constant 0 : i32
    %c0_i32_72 = arith.constant 0 : i32
    %123 = tpu.memref_slice %arg2[%112, %c0_i32_71, %c0_i32_72] : memref<64x1x128xf32, #tpu.memory_space<vmem>> -> memref<1x1x128xf32, #tpu.memory_space<vmem>>
    %124 = tpu.memref_squeeze %123 : memref<1x1x128xf32, #tpu.memory_space<vmem>> -> memref<1x128xf32, #tpu.memory_space<vmem>>
    %c5_i32_73 = arith.constant 5 : i32
    %c0_i32_74 = arith.constant 0 : i32
    %125 = tpu.memref_slice %arg3[%2, %c5_i32_73, %c0_i32_74] : memref<1x8x128xf32, #tpu.memory_space<vmem>> -> memref<1x1x128xf32, #tpu.memory_space<vmem>>
    %126 = tpu.memref_squeeze %125 : memref<1x1x128xf32, #tpu.memory_space<vmem>> -> memref<1x128xf32, #tpu.memory_space<vmem>>
    %127 = tpu.memref_slice %arg4[%c5_i32_70, %122] : memref<8x2x!tpu.dma_semaphore, #tpu.memory_space<semaphore_mem>> -> memref<1x1x!tpu.dma_semaphore, #tpu.memory_space<semaphore_mem>>
    %128 = tpu.memref_squeeze %127 : memref<1x1x!tpu.dma_semaphore, #tpu.memory_space<semaphore_mem>> -> memref<!tpu.dma_semaphore, #tpu.memory_space<semaphore_mem>>
    tpu.enqueue_dma source(%124 : memref<1x128xf32, #tpu.memory_space<vmem>>) target(%126 : memref<1x128xf32, #tpu.memory_space<vmem>>) target_semaphore(%128 : memref<!tpu.dma_semaphore, #tpu.memory_space<semaphore_mem>>)
    %c8_i32_75 = arith.constant 8 : i32
    %129 = arith.muli %2, %c8_i32_75 : i32
    %130 = arith.addi %0, %129 : i32
    %c6_i32 = arith.constant 6 : i32
    %131 = arith.addi %130, %c6_i32 : i32
    %132 = arith.index_cast %131 : i32 to index
    %133 = memref.load %arg1[%132] : memref<16xi32, #tpu.memory_space<smem>>
    %c2_i32_76 = arith.constant 2 : i32
    %c0_i32_77 = arith.constant 0 : i32
    %134 = arith.cmpi eq, %c2_i32_76, %c0_i32_77 : i32
    %c1_i32_78 = arith.constant 1 : i32
    %135 = arith.select %134, %c1_i32_78, %c2_i32_76 : i32
    %136 = arith.remsi %2, %135 : i32
    %c0_i32_79 = arith.constant 0 : i32
    %137 = arith.cmpi ne, %136, %c0_i32_79 : i32
    %c0_i32_80 = arith.constant 0 : i32
    %138 = arith.cmpi slt, %136, %c0_i32_80 : i32
    %c0_i32_81 = arith.constant 0 : i32
    %139 = arith.cmpi slt, %135, %c0_i32_81 : i32
    %140 = arith.xori %138, %139 : i1
    %141 = arith.andi %140, %137 : i1
    %142 = arith.addi %136, %135 : i32
    %143 = arith.select %141, %142, %136 : i32
    %c6_i32_82 = arith.constant 6 : i32
    %c0_i32_83 = arith.constant 0 : i32
    %c0_i32_84 = arith.constant 0 : i32
    %144 = tpu.memref_slice %arg2[%133, %c0_i32_83, %c0_i32_84] : memref<64x1x128xf32, #tpu.memory_space<vmem>> -> memref<1x1x128xf32, #tpu.memory_space<vmem>>
    %145 = tpu.memref_squeeze %144 : memref<1x1x128xf32, #tpu.memory_space<vmem>> -> memref<1x128xf32, #tpu.memory_space<vmem>>
    %c6_i32_85 = arith.constant 6 : i32
    %c0_i32_86 = arith.constant 0 : i32
    %146 = tpu.memref_slice %arg3[%2, %c6_i32_85, %c0_i32_86] : memref<1x8x128xf32, #tpu.memory_space<vmem>> -> memref<1x1x128xf32, #tpu.memory_space<vmem>>
    %147 = tpu.memref_squeeze %146 : memref<1x1x128xf32, #tpu.memory_space<vmem>> -> memref<1x128xf32, #tpu.memory_space<vmem>>
    %148 = tpu.memref_slice %arg4[%c6_i32_82, %143] : memref<8x2x!tpu.dma_semaphore, #tpu.memory_space<semaphore_mem>> -> memref<1x1x!tpu.dma_semaphore, #tpu.memory_space<semaphore_mem>>
    %149 = tpu.memref_squeeze %148 : memref<1x1x!tpu.dma_semaphore, #tpu.memory_space<semaphore_mem>> -> memref<!tpu.dma_semaphore, #tpu.memory_space<semaphore_mem>>
    tpu.enqueue_dma source(%145 : memref<1x128xf32, #tpu.memory_space<vmem>>) target(%147 : memref<1x128xf32, #tpu.memory_space<vmem>>) target_semaphore(%149 : memref<!tpu.dma_semaphore, #tpu.memory_space<semaphore_mem>>)
    %c8_i32_87 = arith.constant 8 : i32
    %150 = arith.muli %2, %c8_i32_87 : i32
    %151 = arith.addi %0, %150 : i32
    %c7_i32 = arith.constant 7 : i32
    %152 = arith.addi %151, %c7_i32 : i32
    %153 = arith.index_cast %152 : i32 to index
    %154 = memref.load %arg1[%153] : memref<16xi32, #tpu.memory_space<smem>>
    %c2_i32_88 = arith.constant 2 : i32
    %c0_i32_89 = arith.constant 0 : i32
    %155 = arith.cmpi eq, %c2_i32_88, %c0_i32_89 : i32
    %c1_i32_90 = arith.constant 1 : i32
    %156 = arith.select %155, %c1_i32_90, %c2_i32_88 : i32
    %157 = arith.remsi %2, %156 : i32
    %c0_i32_91 = arith.constant 0 : i32
    %158 = arith.cmpi ne, %157, %c0_i32_91 : i32
    %c0_i32_92 = arith.constant 0 : i32
    %159 = arith.cmpi slt, %157, %c0_i32_92 : i32
    %c0_i32_93 = arith.constant 0 : i32
    %160 = arith.cmpi slt, %156, %c0_i32_93 : i32
    %161 = arith.xori %159, %160 : i1
    %162 = arith.andi %161, %158 : i1
    %163 = arith.addi %157, %156 : i32
    %164 = arith.select %162, %163, %157 : i32
    %c7_i32_94 = arith.constant 7 : i32
    %c0_i32_95 = arith.constant 0 : i32
    %c0_i32_96 = arith.constant 0 : i32
    %165 = tpu.memref_slice %arg2[%154, %c0_i32_95, %c0_i32_96] : memref<64x1x128xf32, #tpu.memory_space<vmem>> -> memref<1x1x128xf32, #tpu.memory_space<vmem>>
    %166 = tpu.memref_squeeze %165 : memref<1x1x128xf32, #tpu.memory_space<vmem>> -> memref<1x128xf32, #tpu.memory_space<vmem>>
    %c7_i32_97 = arith.constant 7 : i32
    %c0_i32_98 = arith.constant 0 : i32
    %167 = tpu.memref_slice %arg3[%2, %c7_i32_97, %c0_i32_98] : memref<1x8x128xf32, #tpu.memory_space<vmem>> -> memref<1x1x128xf32, #tpu.memory_space<vmem>>
    %168 = tpu.memref_squeeze %167 : memref<1x1x128xf32, #tpu.memory_space<vmem>> -> memref<1x128xf32, #tpu.memory_space<vmem>>
    %169 = tpu.memref_slice %arg4[%c7_i32_94, %164] : memref<8x2x!tpu.dma_semaphore, #tpu.memory_space<semaphore_mem>> -> memref<1x1x!tpu.dma_semaphore, #tpu.memory_space<semaphore_mem>>
    %170 = tpu.memref_squeeze %169 : memref<1x1x!tpu.dma_semaphore, #tpu.memory_space<semaphore_mem>> -> memref<!tpu.dma_semaphore, #tpu.memory_space<semaphore_mem>>
    tpu.enqueue_dma source(%166 : memref<1x128xf32, #tpu.memory_space<vmem>>) target(%168 : memref<1x128xf32, #tpu.memory_space<vmem>>) target_semaphore(%170 : memref<!tpu.dma_semaphore, #tpu.memory_space<semaphore_mem>>)
    %c1_i32_99 = arith.constant 1 : i32
    %c0_i32_100 = arith.constant 0 : i32
    %c1_i32_101 = arith.constant 1 : i32
    %171 = arith.muli %c0_i32_100, %c1_i32_101 : i32
    %c0_i32_102 = arith.constant 0 : i32
    %172 = arith.addi %c0_i32_102, %171 : i32
    %c8_i32_103 = arith.constant 8 : i32
    %173 = arith.muli %172, %c8_i32_103 : i32
    %174 = arith.addi %0, %173 : i32
    %c0_i32_104 = arith.constant 0 : i32
    %175 = arith.addi %174, %c0_i32_104 : i32
    %176 = arith.index_cast %175 : i32 to index
    %177 = memref.load %arg1[%176] : memref<16xi32, #tpu.memory_space<smem>>
    %c2_i32_105 = arith.constant 2 : i32
    %c0_i32_106 = arith.constant 0 : i32
    %178 = arith.cmpi eq, %c2_i32_105, %c0_i32_106 : i32
    %c1_i32_107 = arith.constant 1 : i32
    %179 = arith.select %178, %c1_i32_107, %c2_i32_105 : i32
    %180 = arith.remsi %172, %179 : i32
    %c0_i32_108 = arith.constant 0 : i32
    %181 = arith.cmpi ne, %180, %c0_i32_108 : i32
    %c0_i32_109 = arith.constant 0 : i32
    %182 = arith.cmpi slt, %180, %c0_i32_109 : i32
    %c0_i32_110 = arith.constant 0 : i32
    %183 = arith.cmpi slt, %179, %c0_i32_110 : i32
    %184 = arith.xori %182, %183 : i1
    %185 = arith.andi %184, %181 : i1
    %186 = arith.addi %180, %179 : i32
    %187 = arith.select %185, %186, %180 : i32
    %c0_i32_111 = arith.constant 0 : i32
    %c0_i32_112 = arith.constant 0 : i32
    %c0_i32_113 = arith.constant 0 : i32
    %188 = tpu.memref_slice %arg2[%177, %c0_i32_112, %c0_i32_113] : memref<64x1x128xf32, #tpu.memory_space<vmem>> -> memref<1x1x128xf32, #tpu.memory_space<vmem>>
    %189 = tpu.memref_squeeze %188 : memref<1x1x128xf32, #tpu.memory_space<vmem>> -> memref<1x128xf32, #tpu.memory_space<vmem>>
    %c0_i32_114 = arith.constant 0 : i32
    %c0_i32_115 = arith.constant 0 : i32
    %190 = tpu.memref_slice %arg3[%172, %c0_i32_114, %c0_i32_115] : memref<1x8x128xf32, #tpu.memory_space<vmem>> -> memref<1x1x128xf32, #tpu.memory_space<vmem>>
    %191 = tpu.memref_squeeze %190 : memref<1x1x128xf32, #tpu.memory_space<vmem>> -> memref<1x128xf32, #tpu.memory_space<vmem>>
    %192 = tpu.memref_slice %arg4[%c0_i32_111, %187] : memref<8x2x!tpu.dma_semaphore, #tpu.memory_space<semaphore_mem>> -> memref<1x1x!tpu.dma_semaphore, #tpu.memory_space<semaphore_mem>>
    %193 = tpu.memref_squeeze %192 : memref<1x1x!tpu.dma_semaphore, #tpu.memory_space<semaphore_mem>> -> memref<!tpu.dma_semaphore, #tpu.memory_space<semaphore_mem>>
    tpu.wait_dma2 semaphore(%193 : memref<!tpu.dma_semaphore, #tpu.memory_space<semaphore_mem>>) src(%189 : memref<1x128xf32, #tpu.memory_space<vmem>>) dst(%191 : memref<1x128xf32, #tpu.memory_space<vmem>>)
    %c8_i32_116 = arith.constant 8 : i32
    %194 = arith.muli %172, %c8_i32_116 : i32
    %195 = arith.addi %0, %194 : i32
    %c1_i32_117 = arith.constant 1 : i32
    %196 = arith.addi %195, %c1_i32_117 : i32
    %197 = arith.index_cast %196 : i32 to index
    %198 = memref.load %arg1[%197] : memref<16xi32, #tpu.memory_space<smem>>
    %c2_i32_118 = arith.constant 2 : i32
    %c0_i32_119 = arith.constant 0 : i32
    %199 = arith.cmpi eq, %c2_i32_118, %c0_i32_119 : i32
    %c1_i32_120 = arith.constant 1 : i32
    %200 = arith.select %199, %c1_i32_120, %c2_i32_118 : i32
    %201 = arith.remsi %172, %200 : i32
    %c0_i32_121 = arith.constant 0 : i32
    %202 = arith.cmpi ne, %201, %c0_i32_121 : i32
    %c0_i32_122 = arith.constant 0 : i32
    %203 = arith.cmpi slt, %201, %c0_i32_122 : i32
    %c0_i32_123 = arith.constant 0 : i32
    %204 = arith.cmpi slt, %200, %c0_i32_123 : i32
    %205 = arith.xori %203, %204 : i1
    %206 = arith.andi %205, %202 : i1
    %207 = arith.addi %201, %200 : i32
    %208 = arith.select %206, %207, %201 : i32
    %c1_i32_124 = arith.constant 1 : i32
    %c0_i32_125 = arith.constant 0 : i32
    %c0_i32_126 = arith.constant 0 : i32
    %209 = tpu.memref_slice %arg2[%198, %c0_i32_125, %c0_i32_126] : memref<64x1x128xf32, #tpu.memory_space<vmem>> -> memref<1x1x128xf32, #tpu.memory_space<vmem>>
    %210 = tpu.memref_squeeze %209 : memref<1x1x128xf32, #tpu.memory_space<vmem>> -> memref<1x128xf32, #tpu.memory_space<vmem>>
    %c1_i32_127 = arith.constant 1 : i32
    %c0_i32_128 = arith.constant 0 : i32
    %211 = tpu.memref_slice %arg3[%172, %c1_i32_127, %c0_i32_128] : memref<1x8x128xf32, #tpu.memory_space<vmem>> -> memref<1x1x128xf32, #tpu.memory_space<vmem>>
    %212 = tpu.memref_squeeze %211 : memref<1x1x128xf32, #tpu.memory_space<vmem>> -> memref<1x128xf32, #tpu.memory_space<vmem>>
    %213 = tpu.memref_slice %arg4[%c1_i32_124, %208] : memref<8x2x!tpu.dma_semaphore, #tpu.memory_space<semaphore_mem>> -> memref<1x1x!tpu.dma_semaphore, #tpu.memory_space<semaphore_mem>>
    %214 = tpu.memref_squeeze %213 : memref<1x1x!tpu.dma_semaphore, #tpu.memory_space<semaphore_mem>> -> memref<!tpu.dma_semaphore, #tpu.memory_space<semaphore_mem>>
    tpu.wait_dma2 semaphore(%214 : memref<!tpu.dma_semaphore, #tpu.memory_space<semaphore_mem>>) src(%210 : memref<1x128xf32, #tpu.memory_space<vmem>>) dst(%212 : memref<1x128xf32, #tpu.memory_space<vmem>>)
    %c8_i32_129 = arith.constant 8 : i32
    %215 = arith.muli %172, %c8_i32_129 : i32
    %216 = arith.addi %0, %215 : i32
    %c2_i32_130 = arith.constant 2 : i32
    %217 = arith.addi %216, %c2_i32_130 : i32
    %218 = arith.index_cast %217 : i32 to index
    %219 = memref.load %arg1[%218] : memref<16xi32, #tpu.memory_space<smem>>
    %c2_i32_131 = arith.constant 2 : i32
    %c0_i32_132 = arith.constant 0 : i32
    %220 = arith.cmpi eq, %c2_i32_131, %c0_i32_132 : i32
    %c1_i32_133 = arith.constant 1 : i32
    %221 = arith.select %220, %c1_i32_133, %c2_i32_131 : i32
    %222 = arith.remsi %172, %221 : i32
    %c0_i32_134 = arith.constant 0 : i32
    %223 = arith.cmpi ne, %222, %c0_i32_134 : i32
    %c0_i32_135 = arith.constant 0 : i32
    %224 = arith.cmpi slt, %222, %c0_i32_135 : i32
    %c0_i32_136 = arith.constant 0 : i32
    %225 = arith.cmpi slt, %221, %c0_i32_136 : i32
    %226 = arith.xori %224, %225 : i1
    %227 = arith.andi %226, %223 : i1
    %228 = arith.addi %222, %221 : i32
    %229 = arith.select %227, %228, %222 : i32
    %c2_i32_137 = arith.constant 2 : i32
    %c0_i32_138 = arith.constant 0 : i32
    %c0_i32_139 = arith.constant 0 : i32
    %230 = tpu.memref_slice %arg2[%219, %c0_i32_138, %c0_i32_139] : memref<64x1x128xf32, #tpu.memory_space<vmem>> -> memref<1x1x128xf32, #tpu.memory_space<vmem>>
    %231 = tpu.memref_squeeze %230 : memref<1x1x128xf32, #tpu.memory_space<vmem>> -> memref<1x128xf32, #tpu.memory_space<vmem>>
    %c2_i32_140 = arith.constant 2 : i32
    %c0_i32_141 = arith.constant 0 : i32
    %232 = tpu.memref_slice %arg3[%172, %c2_i32_140, %c0_i32_141] : memref<1x8x128xf32, #tpu.memory_space<vmem>> -> memref<1x1x128xf32, #tpu.memory_space<vmem>>
    %233 = tpu.memref_squeeze %232 : memref<1x1x128xf32, #tpu.memory_space<vmem>> -> memref<1x128xf32, #tpu.memory_space<vmem>>
    %234 = tpu.memref_slice %arg4[%c2_i32_137, %229] : memref<8x2x!tpu.dma_semaphore, #tpu.memory_space<semaphore_mem>> -> memref<1x1x!tpu.dma_semaphore, #tpu.memory_space<semaphore_mem>>
    %235 = tpu.memref_squeeze %234 : memref<1x1x!tpu.dma_semaphore, #tpu.memory_space<semaphore_mem>> -> memref<!tpu.dma_semaphore, #tpu.memory_space<semaphore_mem>>
    tpu.wait_dma2 semaphore(%235 : memref<!tpu.dma_semaphore, #tpu.memory_space<semaphore_mem>>) src(%231 : memref<1x128xf32, #tpu.memory_space<vmem>>) dst(%233 : memref<1x128xf32, #tpu.memory_space<vmem>>)
    %c8_i32_142 = arith.constant 8 : i32
    %236 = arith.muli %172, %c8_i32_142 : i32
    %237 = arith.addi %0, %236 : i32
    %c3_i32_143 = arith.constant 3 : i32
    %238 = arith.addi %237, %c3_i32_143 : i32
    %239 = arith.index_cast %238 : i32 to index
    %240 = memref.load %arg1[%239] : memref<16xi32, #tpu.memory_space<smem>>
    %c2_i32_144 = arith.constant 2 : i32
    %c0_i32_145 = arith.constant 0 : i32
    %241 = arith.cmpi eq, %c2_i32_144, %c0_i32_145 : i32
    %c1_i32_146 = arith.constant 1 : i32
    %242 = arith.select %241, %c1_i32_146, %c2_i32_144 : i32
    %243 = arith.remsi %172, %242 : i32
    %c0_i32_147 = arith.constant 0 : i32
    %244 = arith.cmpi ne, %243, %c0_i32_147 : i32
    %c0_i32_148 = arith.constant 0 : i32
    %245 = arith.cmpi slt, %243, %c0_i32_148 : i32
    %c0_i32_149 = arith.constant 0 : i32
    %246 = arith.cmpi slt, %242, %c0_i32_149 : i32
    %247 = arith.xori %245, %246 : i1
    %248 = arith.andi %247, %244 : i1
    %249 = arith.addi %243, %242 : i32
    %250 = arith.select %248, %249, %243 : i32
    %c3_i32_150 = arith.constant 3 : i32
    %c0_i32_151 = arith.constant 0 : i32
    %c0_i32_152 = arith.constant 0 : i32
    %251 = tpu.memref_slice %arg2[%240, %c0_i32_151, %c0_i32_152] : memref<64x1x128xf32, #tpu.memory_space<vmem>> -> memref<1x1x128xf32, #tpu.memory_space<vmem>>
    %252 = tpu.memref_squeeze %251 : memref<1x1x128xf32, #tpu.memory_space<vmem>> -> memref<1x128xf32, #tpu.memory_space<vmem>>
    %c3_i32_153 = arith.constant 3 : i32
    %c0_i32_154 = arith.constant 0 : i32
    %253 = tpu.memref_slice %arg3[%172, %c3_i32_153, %c0_i32_154] : memref<1x8x128xf32, #tpu.memory_space<vmem>> -> memref<1x1x128xf32, #tpu.memory_space<vmem>>
    %254 = tpu.memref_squeeze %253 : memref<1x1x128xf32, #tpu.memory_space<vmem>> -> memref<1x128xf32, #tpu.memory_space<vmem>>
    %255 = tpu.memref_slice %arg4[%c3_i32_150, %250] : memref<8x2x!tpu.dma_semaphore, #tpu.memory_space<semaphore_mem>> -> memref<1x1x!tpu.dma_semaphore, #tpu.memory_space<semaphore_mem>>
    %256 = tpu.memref_squeeze %255 : memref<1x1x!tpu.dma_semaphore, #tpu.memory_space<semaphore_mem>> -> memref<!tpu.dma_semaphore, #tpu.memory_space<semaphore_mem>>
    tpu.wait_dma2 semaphore(%256 : memref<!tpu.dma_semaphore, #tpu.memory_space<semaphore_mem>>) src(%252 : memref<1x128xf32, #tpu.memory_space<vmem>>) dst(%254 : memref<1x128xf32, #tpu.memory_space<vmem>>)
    %c8_i32_155 = arith.constant 8 : i32
    %257 = arith.muli %172, %c8_i32_155 : i32
    %258 = arith.addi %0, %257 : i32
    %c4_i32_156 = arith.constant 4 : i32
    %259 = arith.addi %258, %c4_i32_156 : i32
    %260 = arith.index_cast %259 : i32 to index
    %261 = memref.load %arg1[%260] : memref<16xi32, #tpu.memory_space<smem>>
    %c2_i32_157 = arith.constant 2 : i32
    %c0_i32_158 = arith.constant 0 : i32
    %262 = arith.cmpi eq, %c2_i32_157, %c0_i32_158 : i32
    %c1_i32_159 = arith.constant 1 : i32
    %263 = arith.select %262, %c1_i32_159, %c2_i32_157 : i32
    %264 = arith.remsi %172, %263 : i32
    %c0_i32_160 = arith.constant 0 : i32
    %265 = arith.cmpi ne, %264, %c0_i32_160 : i32
    %c0_i32_161 = arith.constant 0 : i32
    %266 = arith.cmpi slt, %264, %c0_i32_161 : i32
    %c0_i32_162 = arith.constant 0 : i32
    %267 = arith.cmpi slt, %263, %c0_i32_162 : i32
    %268 = arith.xori %266, %267 : i1
    %269 = arith.andi %268, %265 : i1
    %270 = arith.addi %264, %263 : i32
    %271 = arith.select %269, %270, %264 : i32
    %c4_i32_163 = arith.constant 4 : i32
    %c0_i32_164 = arith.constant 0 : i32
    %c0_i32_165 = arith.constant 0 : i32
    %272 = tpu.memref_slice %arg2[%261, %c0_i32_164, %c0_i32_165] : memref<64x1x128xf32, #tpu.memory_space<vmem>> -> memref<1x1x128xf32, #tpu.memory_space<vmem>>
    %273 = tpu.memref_squeeze %272 : memref<1x1x128xf32, #tpu.memory_space<vmem>> -> memref<1x128xf32, #tpu.memory_space<vmem>>
    %c4_i32_166 = arith.constant 4 : i32
    %c0_i32_167 = arith.constant 0 : i32
    %274 = tpu.memref_slice %arg3[%172, %c4_i32_166, %c0_i32_167] : memref<1x8x128xf32, #tpu.memory_space<vmem>> -> memref<1x1x128xf32, #tpu.memory_space<vmem>>
    %275 = tpu.memref_squeeze %274 : memref<1x1x128xf32, #tpu.memory_space<vmem>> -> memref<1x128xf32, #tpu.memory_space<vmem>>
    %276 = tpu.memref_slice %arg4[%c4_i32_163, %271] : memref<8x2x!tpu.dma_semaphore, #tpu.memory_space<semaphore_mem>> -> memref<1x1x!tpu.dma_semaphore, #tpu.memory_space<semaphore_mem>>
    %277 = tpu.memref_squeeze %276 : memref<1x1x!tpu.dma_semaphore, #tpu.memory_space<semaphore_mem>> -> memref<!tpu.dma_semaphore, #tpu.memory_space<semaphore_mem>>
    tpu.wait_dma2 semaphore(%277 : memref<!tpu.dma_semaphore, #tpu.memory_space<semaphore_mem>>) src(%273 : memref<1x128xf32, #tpu.memory_space<vmem>>) dst(%275 : memref<1x128xf32, #tpu.memory_space<vmem>>)
    %c8_i32_168 = arith.constant 8 : i32
    %278 = arith.muli %172, %c8_i32_168 : i32
    %279 = arith.addi %0, %278 : i32
    %c5_i32_169 = arith.constant 5 : i32
    %280 = arith.addi %279, %c5_i32_169 : i32
    %281 = arith.index_cast %280 : i32 to index
    %282 = memref.load %arg1[%281] : memref<16xi32, #tpu.memory_space<smem>>
    %c2_i32_170 = arith.constant 2 : i32
    %c0_i32_171 = arith.constant 0 : i32
    %283 = arith.cmpi eq, %c2_i32_170, %c0_i32_171 : i32
    %c1_i32_172 = arith.constant 1 : i32
    %284 = arith.select %283, %c1_i32_172, %c2_i32_170 : i32
    %285 = arith.remsi %172, %284 : i32
    %c0_i32_173 = arith.constant 0 : i32
    %286 = arith.cmpi ne, %285, %c0_i32_173 : i32
    %c0_i32_174 = arith.constant 0 : i32
    %287 = arith.cmpi slt, %285, %c0_i32_174 : i32
    %c0_i32_175 = arith.constant 0 : i32
    %288 = arith.cmpi slt, %284, %c0_i32_175 : i32
    %289 = arith.xori %287, %288 : i1
    %290 = arith.andi %289, %286 : i1
    %291 = arith.addi %285, %284 : i32
    %292 = arith.select %290, %291, %285 : i32
    %c5_i32_176 = arith.constant 5 : i32
    %c0_i32_177 = arith.constant 0 : i32
    %c0_i32_178 = arith.constant 0 : i32
    %293 = tpu.memref_slice %arg2[%282, %c0_i32_177, %c0_i32_178] : memref<64x1x128xf32, #tpu.memory_space<vmem>> -> memref<1x1x128xf32, #tpu.memory_space<vmem>>
    %294 = tpu.memref_squeeze %293 : memref<1x1x128xf32, #tpu.memory_space<vmem>> -> memref<1x128xf32, #tpu.memory_space<vmem>>
    %c5_i32_179 = arith.constant 5 : i32
    %c0_i32_180 = arith.constant 0 : i32
    %295 = tpu.memref_slice %arg3[%172, %c5_i32_179, %c0_i32_180] : memref<1x8x128xf32, #tpu.memory_space<vmem>> -> memref<1x1x128xf32, #tpu.memory_space<vmem>>
    %296 = tpu.memref_squeeze %295 : memref<1x1x128xf32, #tpu.memory_space<vmem>> -> memref<1x128xf32, #tpu.memory_space<vmem>>
    %297 = tpu.memref_slice %arg4[%c5_i32_176, %292] : memref<8x2x!tpu.dma_semaphore, #tpu.memory_space<semaphore_mem>> -> memref<1x1x!tpu.dma_semaphore, #tpu.memory_space<semaphore_mem>>
    %298 = tpu.memref_squeeze %297 : memref<1x1x!tpu.dma_semaphore, #tpu.memory_space<semaphore_mem>> -> memref<!tpu.dma_semaphore, #tpu.memory_space<semaphore_mem>>
    tpu.wait_dma2 semaphore(%298 : memref<!tpu.dma_semaphore, #tpu.memory_space<semaphore_mem>>) src(%294 : memref<1x128xf32, #tpu.memory_space<vmem>>) dst(%296 : memref<1x128xf32, #tpu.memory_space<vmem>>)
    %c8_i32_181 = arith.constant 8 : i32
    %299 = arith.muli %172, %c8_i32_181 : i32
    %300 = arith.addi %0, %299 : i32
    %c6_i32_182 = arith.constant 6 : i32
    %301 = arith.addi %300, %c6_i32_182 : i32
    %302 = arith.index_cast %301 : i32 to index
    %303 = memref.load %arg1[%302] : memref<16xi32, #tpu.memory_space<smem>>
    %c2_i32_183 = arith.constant 2 : i32
    %c0_i32_184 = arith.constant 0 : i32
    %304 = arith.cmpi eq, %c2_i32_183, %c0_i32_184 : i32
    %c1_i32_185 = arith.constant 1 : i32
    %305 = arith.select %304, %c1_i32_185, %c2_i32_183 : i32
    %306 = arith.remsi %172, %305 : i32
    %c0_i32_186 = arith.constant 0 : i32
    %307 = arith.cmpi ne, %306, %c0_i32_186 : i32
    %c0_i32_187 = arith.constant 0 : i32
    %308 = arith.cmpi slt, %306, %c0_i32_187 : i32
    %c0_i32_188 = arith.constant 0 : i32
    %309 = arith.cmpi slt, %305, %c0_i32_188 : i32
    %310 = arith.xori %308, %309 : i1
    %311 = arith.andi %310, %307 : i1
    %312 = arith.addi %306, %305 : i32
    %313 = arith.select %311, %312, %306 : i32
    %c6_i32_189 = arith.constant 6 : i32
    %c0_i32_190 = arith.constant 0 : i32
    %c0_i32_191 = arith.constant 0 : i32
    %314 = tpu.memref_slice %arg2[%303, %c0_i32_190, %c0_i32_191] : memref<64x1x128xf32, #tpu.memory_space<vmem>> -> memref<1x1x128xf32, #tpu.memory_space<vmem>>
    %315 = tpu.memref_squeeze %314 : memref<1x1x128xf32, #tpu.memory_space<vmem>> -> memref<1x128xf32, #tpu.memory_space<vmem>>
    %c6_i32_192 = arith.constant 6 : i32
    %c0_i32_193 = arith.constant 0 : i32
    %316 = tpu.memref_slice %arg3[%172, %c6_i32_192, %c0_i32_193] : memref<1x8x128xf32, #tpu.memory_space<vmem>> -> memref<1x1x128xf32, #tpu.memory_space<vmem>>
    %317 = tpu.memref_squeeze %316 : memref<1x1x128xf32, #tpu.memory_space<vmem>> -> memref<1x128xf32, #tpu.memory_space<vmem>>
    %318 = tpu.memref_slice %arg4[%c6_i32_189, %313] : memref<8x2x!tpu.dma_semaphore, #tpu.memory_space<semaphore_mem>> -> memref<1x1x!tpu.dma_semaphore, #tpu.memory_space<semaphore_mem>>
    %319 = tpu.memref_squeeze %318 : memref<1x1x!tpu.dma_semaphore, #tpu.memory_space<semaphore_mem>> -> memref<!tpu.dma_semaphore, #tpu.memory_space<semaphore_mem>>
    tpu.wait_dma2 semaphore(%319 : memref<!tpu.dma_semaphore, #tpu.memory_space<semaphore_mem>>) src(%315 : memref<1x128xf32, #tpu.memory_space<vmem>>) dst(%317 : memref<1x128xf32, #tpu.memory_space<vmem>>)
    %c8_i32_194 = arith.constant 8 : i32
    %320 = arith.muli %172, %c8_i32_194 : i32
    %321 = arith.addi %0, %320 : i32
    %c7_i32_195 = arith.constant 7 : i32
    %322 = arith.addi %321, %c7_i32_195 : i32
    %323 = arith.index_cast %322 : i32 to index
    %324 = memref.load %arg1[%323] : memref<16xi32, #tpu.memory_space<smem>>
    %c2_i32_196 = arith.constant 2 : i32
    %c0_i32_197 = arith.constant 0 : i32
    %325 = arith.cmpi eq, %c2_i32_196, %c0_i32_197 : i32
    %c1_i32_198 = arith.constant 1 : i32
    %326 = arith.select %325, %c1_i32_198, %c2_i32_196 : i32
    %327 = arith.remsi %172, %326 : i32
    %c0_i32_199 = arith.constant 0 : i32
    %328 = arith.cmpi ne, %327, %c0_i32_199 : i32
    %c0_i32_200 = arith.constant 0 : i32
    %329 = arith.cmpi slt, %327, %c0_i32_200 : i32
    %c0_i32_201 = arith.constant 0 : i32
    %330 = arith.cmpi slt, %326, %c0_i32_201 : i32
    %331 = arith.xori %329, %330 : i1
    %332 = arith.andi %331, %328 : i1
    %333 = arith.addi %327, %326 : i32
    %334 = arith.select %332, %333, %327 : i32
    %c7_i32_202 = arith.constant 7 : i32
    %c0_i32_203 = arith.constant 0 : i32
    %c0_i32_204 = arith.constant 0 : i32
    %335 = tpu.memref_slice %arg2[%324, %c0_i32_203, %c0_i32_204] : memref<64x1x128xf32, #tpu.memory_space<vmem>> -> memref<1x1x128xf32, #tpu.memory_space<vmem>>
    %336 = tpu.memref_squeeze %335 : memref<1x1x128xf32, #tpu.memory_space<vmem>> -> memref<1x128xf32, #tpu.memory_space<vmem>>
    %c7_i32_205 = arith.constant 7 : i32
    %c0_i32_206 = arith.constant 0 : i32
    %337 = tpu.memref_slice %arg3[%172, %c7_i32_205, %c0_i32_206] : memref<1x8x128xf32, #tpu.memory_space<vmem>> -> memref<1x1x128xf32, #tpu.memory_space<vmem>>
    %338 = tpu.memref_squeeze %337 : memref<1x1x128xf32, #tpu.memory_space<vmem>> -> memref<1x128xf32, #tpu.memory_space<vmem>>
    %339 = tpu.memref_slice %arg4[%c7_i32_202, %334] : memref<8x2x!tpu.dma_semaphore, #tpu.memory_space<semaphore_mem>> -> memref<1x1x!tpu.dma_semaphore, #tpu.memory_space<semaphore_mem>>
    %340 = tpu.memref_squeeze %339 : memref<1x1x!tpu.dma_semaphore, #tpu.memory_space<semaphore_mem>> -> memref<!tpu.dma_semaphore, #tpu.memory_space<semaphore_mem>>
    tpu.wait_dma2 semaphore(%340 : memref<!tpu.dma_semaphore, #tpu.memory_space<semaphore_mem>>) src(%336 : memref<1x128xf32, #tpu.memory_space<vmem>>) dst(%338 : memref<1x128xf32, #tpu.memory_space<vmem>>)
    %c1_i32_207 = arith.constant 1 : i32
    return
  }
  func.func @transform_0(%arg0: i32) -> i32 {
    %c0_i32 = arith.constant 0 : i32
    %c0_i32_0 = arith.constant 0 : i32
    return %c0_i32 : i32
  }
  func.func @transform_1(%arg0: i32) -> (i32, i32, i32) {
    %c0_i32 = arith.constant 0 : i32
    %c0_i32_0 = arith.constant 0 : i32
    %c0_i32_1 = arith.constant 0 : i32
    %c0_i32_2 = arith.constant 0 : i32
    return %c0_i32, %c0_i32_0, %c0_i32_1 : i32, i32, i32
  }
  func.func @transform_2(%arg0: i32) -> (i32, i32, i32) {
    %c0_i32 = arith.constant 0 : i32
    %c0_i32_0 = arith.constant 0 : i32
    %c0_i32_1 = arith.constant 0 : i32
    return %arg0, %c0_i32, %c0_i32_0 : i32, i32, i32
  }
}

</mosaic_0001>

<bundles_post_ra>
// kernel: embedder_forward.1
= control target key start
LH: loop header
LB: loop body
LE: loop exit
PB: predicated region body
PF: predicated region fallthrough
CT: control target
= control target key end

     0   :  { %7 = vsyncpa [#allocation6], 0  ;;  %s1288_s0 = inlined_call_operand.vmem [shape: s32[16], index: 0, kind: input, shape index: {}]   ;;  %s1289_s1 = inlined_call_operand.hbm [shape: f32[64,1,128], index: 1, kind: input, shape index: {}]   ;;  %s1290_s2 = inlined_call_operand.hbm [shape: f32[2,8,128], index: 2, kind: output, shape index: {}]  }
   0x1   :  { %8 = vsyncpa [#allocation4], 0 }
   0x2   :  { %9 = vsyncpa [#allocation5], 0 }
   0x3   :  { %11 = vsyncpa [#allocation5 + $0x1], 0  ;;  %s1113_s9 = smov 0   ;;  %s1115_s10 = smov 0  }
   0x4   :  { %s1117_s11 = smov 0   ;;  %s1119_s12 = smov 0  }
   0x5 LB: > { %s1134_s13 = sadd.s32 4294967295, %s1091_s12   ;;  %s857_s14 = sadd.s32 4294967294, %s1091_s12   ;;  %s1091_s12 = sphi %s1119_s12, %s1304_s12   ;;  %s1087_s11 = sphi %s1117_s11, %s1303_s11   ;;  %s1083_s10 = sphi %s1115_s10, %s1302_s10   ;;  %s1079_s9 = sphi %s1113_s9, %s1301_s9  }
   0x6   : > { %s1138_s15 = sadd.s32 1, %s1091_s12   ;;  %s66_s16 = sadd.s32 1, %s1087_s11 }
   0x7   : > { %s63_s17 = ssub.s32 %s1091_s12, %s1138_s15  ;;  %p76_p0 = scmp.ne.s32.totalorder %s1087_s11, %s1083_s10 }
   0x8   : > { %p64_p1 = scmp.eq.s32.totalorder %s63_s17, 0  ;;  %p77_p2 = scmp.eq.s32.totalorder %s1134_s13, 1 }
   0x9   : > { %p82_p3 = scmp.ne.s32.totalorder %s1083_s10, %s1079_s9  ;;  %p83_p4 = scmp.eq.s32.totalorder %s857_s14, 1 }
   0xa   : > { %s1149_s18 = scalar_select %p64_p1, %s1087_s11, %s66_s16  }
   0xb   : > { %p1151_p5 = por %p77_p2, %p76_p0  ;;  %p1155_p6 = por %p83_p4, %p82_p3 }
   0xc   : > { %p858_p7 = scmp.ge.s32.totalorder %s1091_s12, 1  ;;  %p90_p8 = scmp.lt.s32.totalorder %s1091_s12, 3 }
   0xd   : > { %s1293_s20 = scalar_select %p1155_p6, 1, 0 }
   0xe   : > { %p1291_p9 = scmp.eq.s32.totalorder %s1134_s13, 0  ;;  %p1162_p10 = pnand %p858_p7, %p90_p8 }
   0xf   : > { %s103_s24 = sshll.u32 %s1288_s0, 4  ;;  %s1093_s25 = smov [#allocation7]   ;;  %s104_s24 = int_to_ptr.vmem [resolvable:$true] %s103_s24 }
  0x10   : > { %p910_p11 = pneg %p1162_p10  ;;  %s113_s26 = sshll.u32 %s1093_s25, 4  ;;  %s1177_s26 = int_to_ptr.vmem [resolvable:$true] %s113_s26 }
  0x11   : > { %s962_s28 = scalar_lea.vmem %s104_s24, 16  ;;  %p970_p3 = scmp.lt.s32.totalorder %s104_s24, %s104_s24 }
  0x12   : > { %p1173_p12 = pnand %p1291_p9, %p910_p11  ;;  %p963_p13 = scmp.ne.s32.totalorder %s104_s24, %s962_s28 }
  0x13   : > { %p971_p4 = scmp.lt.s32.totalorder %s962_s28, %s962_s28 }
  0x14   : > { %p964_p0 = pneg %p1173_p12 }
  0x15   : > { %p972_p7 = por %p971_p4, %p970_p3 }
  0x16   : > { %p965_p1 = pnand %p964_p0, %p963_p13 }
  0x18   : > { %p966_p2 = pneg %p965_p1 }
  0x1a   : > { %p973_p8 = pnand %p972_p7, %p966_p2 }
  0x1c   : > { %976 = shalt.err (!%p973_p8)
}
  0x1d   : > { %s1094_s29 = smov [#allocation3]   ;;  %s977_s4 = scalar_lea.hbm %s1289_s1, 1024 }
  0x1e   : > { %913 = dma.vmem_to_smem (!%p1173_p12), %s104_s24, 16, %s1094_s29, [#allocation6]  }
  0x1f   : > { %p978_p11 = scmp.ne.s32.totalorder %s1289_s1, %s977_s4  ;;  %p984_p2 = scmp.lt.u32.totalorder %s977_s4, %s1289_s1 }
  0x21   : > { %p980_p13 = pnand %p978_p11, %p964_p0 }
  0x23   : > { %p981_p1 = pneg %p980_p13 }
  0x25   : > { %p986_p3 = pnand %p984_p2, %p981_p1 }
  0x27   : > { %989 = shalt.err (!%p986_p3)
}
  0x28   : > { %s990_s14 = scalar_lea.vmem %s1177_s26, 1024  ;;  %p998_p9 = scmp.lt.s32.totalorder %s1177_s26, %s1177_s26 }
  0x29   : > { %p991_p4 = scmp.ne.s32.totalorder %s1177_s26, %s990_s14  ;;  %p999_p11 = scmp.lt.s32.totalorder %s990_s14, %s990_s14 }
  0x2b   : > { %p993_p7 = pnand %p991_p4, %p964_p0  ;;  %p1000_p13 = por %p999_p11, %p998_p9 }
  0x2d   : > { %p994_p8 = pneg %p993_p7 }
  0x2f   : > { %p1001_p6 = pnand %p1000_p13, %p994_p8 }
  0x31   : > { %1004 = shalt.err (!%p1001_p6)
}
  0x32   : > { %s1095_s16 = smov 16   ;;  %s1096_s17 = smov 1  }
  0x33   : > { %916 = dma.hbm_to_vmem [thread:$0]  (!%p1173_p12), %s1289_s1, 1024, %s1177_s26, [#allocation4], %s1095_s16, %s1095_s16, %s1096_s17  }
  0x34   : > { %129 = sbr.rel (%p1162_p10) target bundleno = 186 (0xba), region = 28  ;;  %p1296_p0 = scmp.eq.s32.totalorder (!%p1162_p10), %s1134_s13, 0 }
  0x3b   : > { %1050 = dma.done.wait (%p1296_p0), [#allocation6], 16   ;;  %p1297_p1 = pmov %p1296_p0 }
  0x3c   : > { %p1298_p6 = pmov %p1296_p0 }
  0x3d   : > { %1052 = vsyncadd (%p1297_p1), [#allocation6], 4294967280 }
  0x3e   : > { %1054 = dma.done.wait (%p1298_p6), [#allocation4], 1024   ;;  %p1299_p9 = pmov %p1296_p0 }
  0x40   : > { %1056 = vsyncadd (%p1299_p9), [#allocation4], 4294966272 }
  0x41   : > { %139 = sfence }
  0x42   : > { %s148_s24 = sand.u32 1, %s1083_s10   ;;  %s1223_s25 = sshll.u32 %s1134_s13, 3 }
  0x43   : > { %s152_s21 = sld [smem:[#allocation3 + %s1223_s25]]  ;;  %s864_s26 = sshll.u32 %s148_s24, 3 }
  0x44   : > { %s1228_s28 = scalar_lea.vmem [#allocation8], %s864_s26 }
  0x49   : > { %s153_s27 = scalar_lea.vmem [#allocation7], %s152_s21 }
  0x4a   : > { %v171_v0 = vld [vmem:[%s153_s27] sm:$0x1] }
  0x4b   : > { %172 = vst [vmem:[%s1228_s28] sm:$0x1] %v171_v0 }
  0x4c   : > { %197 = vsyncadd [#allocation2], 16  ;;  %s198_s29 = sadd.s32 1, %s1223_s25 }
  0x4d   : > { %s199_s30 = sld [smem:[#allocation3 + %s198_s29]] }
  0x53   : > { %s200_s3 = scalar_lea.vmem [#allocation7], %s199_s30 }
  0x54   : > { %v220_v1 = vld [vmem:[%s200_s3] sm:$0x1] }
  0x55   : > { %867 = vst [vmem:[%s1228_s28 + $0x1] sm:$0x1] %v220_v1 }
  0x56   : > { %246 = vsyncadd [#allocation2 + $0x2], 16  ;;  %s247_s4 = sadd.s32 2, %s1223_s25 }
  0x57   : > { %s248_s5 = sld [smem:[#allocation3 + %s247_s4]] }
  0x5d   : > { %s249_s6 = scalar_lea.vmem [#allocation7], %s248_s5 }
  0x5e   : > { %v269_v2 = vld [vmem:[%s249_s6] sm:$0x1] }
  0x5f   : > { %869 = vst [vmem:[%s1228_s28 + $0x2] sm:$0x1] %v269_v2 }
  0x60   : > { %295 = vsyncadd [#allocation2 + $0x4], 16  ;;  %s296_s7 = sadd.s32 3, %s1223_s25 }
  0x61   : > { %s297_s8 = sld [smem:[#allocation3 + %s296_s7]] }
  0x67   : > { %s298_s14 = scalar_lea.vmem [#allocation7], %s297_s8 }
  0x68   : > { %v318_v3 = vld [vmem:[%s298_s14] sm:$0x1] }
  0x69   : > { %871 = vst [vmem:[%s1228_s28 + $0x3] sm:$0x1] %v318_v3 }
  0x6a   : > { %344 = vsyncadd [#allocation2 + $0x6], 16  ;;  %s345_s16 = sadd.s32 4, %s1223_s25 }
  0x6b   : > { %s346_s17 = sld [smem:[#allocation3 + %s345_s16]] }
  0x71   : > { %s347_s22 = scalar_lea.vmem [#allocation7], %s346_s17 }
  0x72   : > { %v367_v4 = vld [vmem:[%s347_s22] sm:$0x1] }
  0x73   : > { %873 = vst [vmem:[%s1228_s28 + $0x4] sm:$0x1] %v367_v4 }
  0x74   : > { %393 = vsyncadd [#allocation2 + $0x8], 16  ;;  %s394_s23 = sadd.s32 5, %s1223_s25 }
  0x75   : > { %s395_s21 = sld [smem:[#allocation3 + %s394_s23]] }
  0x7b   : > { %s396_s26 = scalar_lea.vmem [#allocation7], %s395_s21 }
  0x7c   : > { %v416_v5 = vld [vmem:[%s396_s26] sm:$0x1] }
  0x7d   : > { %875 = vst [vmem:[%s1228_s28 + $0x5] sm:$0x1] %v416_v5 }
  0x7e   : > { %442 = vsyncadd [#allocation2 + $0xa], 16  ;;  %s443_s27 = sadd.s32 6, %s1223_s25 }
  0x7f   : > { %s444_s29 = sld [smem:[#allocation3 + %s443_s27]] }
  0x85   : > { %s445_s30 = scalar_lea.vmem [#allocation7], %s444_s29 }
  0x86   : > { %v465_v6 = vld [vmem:[%s445_s30] sm:$0x1] }
  0x87   : > { %877 = vst [vmem:[%s1228_s28 + $0x6] sm:$0x1] %v465_v6 }
  0x88   : > { %491 = vsyncadd [#allocation2 + $0xc], 16  ;;  %s492_s3 = sadd.s32 7, %s1223_s25 }
  0x89   : > { %s493_s4 = sld [smem:[#allocation3 + %s492_s3]] }
  0x8f   : > { %s494_s5 = scalar_lea.vmem [#allocation7], %s493_s4 }
  0x90   : > { %v514_v7 = vld [vmem:[%s494_s5] sm:$0x1] }
  0x91   : > { %879 = vst [vmem:[%s1228_s28 + $0x7] sm:$0x1] %v514_v7 }
  0x92   : > { %540 = vsyncadd [#allocation2 + $0xe], 16 }
  0x93   : > { %1057 = dma.done.wait [#allocation2], 16 }
  0x94   : > { %1058 = vsyncadd [#allocation2], 4294967280 }
  0x95   : > { %1059 = dma.done.wait [#allocation2 + $0x2], 16 }
  0x96   : > { %1060 = vsyncadd [#allocation2 + $0x2], 4294967280 }
  0x97   : > { %1061 = dma.done.wait [#allocation2 + $0x4], 16 }
  0x98   : > { %1062 = vsyncadd [#allocation2 + $0x4], 4294967280 }
  0x99   : > { %1063 = dma.done.wait [#allocation2 + $0x6], 16 }
  0x9a   : > { %1064 = vsyncadd [#allocation2 + $0x6], 4294967280 }
  0x9b   : > { %1065 = dma.done.wait [#allocation2 + $0x8], 16 }
  0x9c   : > { %1066 = vsyncadd [#allocation2 + $0x8], 4294967280 }
  0x9d   : > { %1067 = dma.done.wait [#allocation2 + $0xa], 16 }
  0x9e   : > { %1068 = vsyncadd [#allocation2 + $0xa], 4294967280 }
  0x9f   : > { %1069 = dma.done.wait [#allocation2 + $0xc], 16 }
  0xa0   : > { %1070 = vsyncadd [#allocation2 + $0xc], 4294967280 }
  0xa1   : > { %1071 = dma.done.wait [#allocation2 + $0xe], 16 }
  0xa2   : > { %1072 = vsyncadd [#allocation2 + $0xe], 4294967280  ;;  %s881_s25 = sshll.u32 %s1134_s13, 7  ;;  %s580_s14 = sshll.u32 %s1228_s28, 4  ;;  %s581_s14 = int_to_ptr.vmem [resolvable:$true] %s580_s14 }
  0xa3   : > { %s1249_s8 = scalar_lea.hbm %s1290_s2, %s881_s25  ;;  %s567_s16 = scalar_lea.sflag [#allocation5], %s148_s24 }
  0xa4   : > { %s1005_s17 = scalar_lea.vmem %s581_s14, 128  ;;  %s1097_s22 = smov [#allocation8]  }
  0xa5   : > { %p1006_p10 = scmp.ne.s32.totalorder %s581_s14, %s1005_s17  ;;  %s1009_s23 = sshll.u32 %s1097_s22, 4  ;;  %s1010_s23 = int_to_ptr.vmem [resolvable:$false] %s1009_s23 }
  0xa6   : > { %s1011_s21 = scalar_lea.vmem %s1010_s23, 256  ;;  %p1012_p3 = scmp.lt.s32.totalorder %s581_s14, %s1010_s23 }
  0xa7   : > { %p1007_p12 = pnand %p1006_p10, %p1151_p5  ;;  %p1013_p4 = scmp.lt.s32.totalorder %s1011_s21, %s1005_s17 }
  0xa9   : > { %p1008_p2 = pneg %p1007_p12  ;;  %p1014_p7 = por %p1013_p4, %p1012_p3 }
  0xab   : > { %p1015_p8 = pnand %p1014_p7, %p1008_p2 }
  0xad   : > { %1018 = shalt.err (!%p1015_p8)
}
  0xae   : > { %s1019_s13 = scalar_lea.hbm %s1249_s8, 128  ;;  %s1023_s26 = scalar_lea.hbm %s1290_s2, 256 }
  0xaf   : > { %p1020_p11 = scmp.ne.s32.totalorder %s1249_s8, %s1019_s13  ;;  %p1024_p1 = scmp.lt.u32.totalorder %s1249_s8, %s1290_s2 }
  0xb0   : > { %p1025_p6 = scmp.lt.u32.totalorder %s1023_s26, %s1019_s13  ;;  %p1027_p10 = scmp.lt.u32.totalorder %s1019_s13, %s1249_s8 }
  0xb1   : > { %p1021_p13 = pnand %p1020_p11, %p1151_p5 }
  0xb2   : > { %p1026_p9 = por %p1025_p6, %p1024_p1 }
  0xb3   : > { %p1022_p0 = pneg %p1021_p13 }
  0xb4   : > { %p1028_p12 = por %p1027_p10, %p1026_p9 }
  0xb6   : > { %p1029_p2 = pnand %p1028_p12, %p1022_p0 }
  0xb8   : > { %1032 = shalt.err (!%p1029_p2)
}
  0xb9   : > { %908 = dma.vmem_to_hbm [thread:$0]  (%p1151_p5), %s581_s14, 128, %s1249_s8, %s567_s16  }
  0xba PF: > { %p925_p3 = scmp.ge.s32.totalorder %s1091_s12, 2  ;;  %s592_s30 = sand.u32 1, %s1079_s9  }
  0xbb   : > { %p1300_p4 = scmp.ne.s32.totalorder %s1293_s20, 0  ;;  %s593_s3 = scalar_lea.sflag [#allocation5], %s592_s30 }
  0xbd   : > { %p918_p7 = pnand %p925_p3, %p1300_p4 }
  0xbf   : > { %1074 = dma.done.wait (!%p918_p7), %s593_s3, 128  }
  0xc0   : > { %1076 = vsyncadd (!%p918_p7), %s593_s3, 4294967168  ;;  %p14_p8 = scmp.ge.s32.totalorder %s1138_s15, 4   ;;  %s1301_s9 = smov %s1083_s10 }
  0xc1   : > { %s1302_s10 = smov %s1087_s11  ;;  %s1303_s11 = smov %s1149_s18 }
  0xc2   : > { %s1304_s12 = smov %s1138_s15  ;;  %16 = sbr.rel (!%p14_p8) target bundleno = 5 (0x5), region = 427 }
  0xc9   :  { %598 = vsyncpa [#allocation4], 1 }
  0xca   :  { %600 = vsyncpa [#allocation4 + $0x1], 1 }
  0xcb   :  { %601 = vsyncpa [#allocation5], 1 }
  0xcc   :  { %603 = vsyncpa [#allocation5 + $0x1], 1 }
  0xcd   :  { %604 = vsyncpa [#allocation6], 1 }
  0xce   :  { %606 = vsyncpa [#allocation6 + $0x1], 1 }
  0xcf   :  { %607 = vsyncmov [#allocation2] }
  0xd2   :  { %s608_s12 = vpop.sfrf %607 }
  0xd3   :  { %p884_p5 = scmp.ne.s32.totalorder %s608_s12, 0 }
  0xd5   :  { %612 = shalt.err (%p884_p5)  }
  0xd6   :  { %614 = vsyncmov [#allocation2 + $0x1] }
  0xd9   :  { %s615_s19 = vpop.sfrf %614 }
  0xda   :  { %p885_p11 = scmp.ne.s32.totalorder %s615_s19, 0 }
  0xdc   :  { %619 = shalt.err (%p885_p11)  }
  0xdd   :  { %621 = vsyncmov [#allocation2 + $0x2] }
  0xe0   :  { %s622_s20 = vpop.sfrf %621 }
  0xe1   :  { %p886_p13 = scmp.ne.s32.totalorder %s622_s20, 0 }
  0xe3   :  { %626 = shalt.err (%p886_p13)  }
  0xe4   :  { %628 = vsyncmov [#allocation2 + $0x3] }
  0xe7   :  { %s629_s15 = vpop.sfrf %628 }
  0xe8   :  { %p887_p0 = scmp.ne.s32.totalorder %s629_s15, 0 }
  0xea   :  { %633 = shalt.err (%p887_p0)  }
  0xeb   :  { %635 = vsyncmov [#allocation2 + $0x4] }
  0xee   :  { %s636_s0 = vpop.sfrf %635 }
  0xef   :  { %p888_p1 = scmp.ne.s32.totalorder %s636_s0, 0 }
  0xf1   :  { %640 = shalt.err (%p888_p1)  }
  0xf2   :  { %642 = vsyncmov [#allocation2 + $0x5] }
  0xf5   :  { %s643_s1 = vpop.sfrf %642 }
  0xf6   :  { %p889_p6 = scmp.ne.s32.totalorder %s643_s1, 0 }
  0xf8   :  { %647 = shalt.err (%p889_p6)  }
  0xf9   :  { %649 = vsyncmov [#allocation2 + $0x6] }
  0xfc   :  { %s650_s2 = vpop.sfrf %649 }
  0xfd   :  { %p890_p9 = scmp.ne.s32.totalorder %s650_s2, 0 }
  0xff   :  { %654 = shalt.err (%p890_p9)  }
 0x100   :  { %656 = vsyncmov [#allocation2 + $0x7] }
 0x103   :  { %s657_s9 = vpop.sfrf %656 }
 0x104   :  { %p891_p10 = scmp.ne.s32.totalorder %s657_s9, 0 }
 0x106   :  { %661 = shalt.err (%p891_p10)  }
 0x107   :  { %663 = vsyncmov [#allocation2 + $0x8] }
 0x10a   :  { %s664_s10 = vpop.sfrf %663 }
 0x10b   :  { %p892_p12 = scmp.ne.s32.totalorder %s664_s10, 0 }
 0x10d   :  { %668 = shalt.err (%p892_p12)  }
 0x10e   :  { %670 = vsyncmov [#allocation2 + $0x9] }
 0x111   :  { %s671_s11 = vpop.sfrf %670 }
 0x112   :  { %p893_p2 = scmp.ne.s32.totalorder %s671_s11, 0 }
 0x114   :  { %675 = shalt.err (%p893_p2)  }
 0x115   :  { %677 = vsyncmov [#allocation2 + $0xa] }
 0x118   :  { %s678_s18 = vpop.sfrf %677 }
 0x119   :  { %p894_p3 = scmp.ne.s32.totalorder %s678_s18, 0 }
 0x11b   :  { %682 = shalt.err (%p894_p3)  }
 0x11c   :  { %684 = vsyncmov [#allocation2 + $0xb] }
 0x11f   :  { %s685_s4 = vpop.sfrf %684 }
 0x120   :  { %p895_p4 = scmp.ne.s32.totalorder %s685_s4, 0 }
 0x122   :  { %689 = shalt.err (%p895_p4)  }
 0x123   :  { %691 = vsyncmov [#allocation2 + $0xc] }
 0x126   :  { %s692_s5 = vpop.sfrf %691 }
 0x127   :  { %p896_p7 = scmp.ne.s32.totalorder %s692_s5, 0 }
 0x129   :  { %696 = shalt.err (%p896_p7)  }
 0x12a   :  { %698 = vsyncmov [#allocation2 + $0xd] }
 0x12d   :  { %s699_s25 = vpop.sfrf %698 }
 0x12e   :  { %p897_p8 = scmp.ne.s32.totalorder %s699_s25, 0 }
 0x130   :  { %703 = shalt.err (%p897_p8)  }
 0x131   :  { %705 = vsyncmov [#allocation2 + $0xe] }
 0x134   :  { %s706_s6 = vpop.sfrf %705 }
 0x135   :  { %p898_p5 = scmp.ne.s32.totalorder %s706_s6, 0 }
 0x137   :  { %710 = shalt.err (%p898_p5)  }
 0x138   :  { %712 = vsyncmov [#allocation2 + $0xf] }
 0x13b   :  { %s713_s7 = vpop.sfrf %712 }
 0x13c   :  { %p899_p11 = scmp.ne.s32.totalorder %s713_s7, 0 }
 0x13e   :  { %717 = shalt.err (%p899_p11)  }

</bundles_post_ra>
